<compile_context>
chip_gen: v7x
topology: tpu7x:2x2x1
jax: 0.10.0
libtpu: 0.0.40
codegen_flags: <defaults>
</compile_context>

<pallas_src>
import jax
import jax.numpy as jnp
from jax import lax
from jax.experimental import pallas as pl
from jax.experimental.pallas import tpu as pltpu


_LANE = 128
_TARGET_BLOCK_BYTES = 2 << 20        # ~2 MiB/block: past the HBM-roofline knee
_VMEM_REQUEST_CAP = 48 << 20         # stay well under v7x's 64 MiB per-TC VMEM


def _sublane_packing(dtype) -> int:
    """Rows per packed sublane group: 8 (f32), 16 (bf16/f16), 32 (int8/fp8)."""
    return max(8, 32 // int(jnp.dtype(dtype).itemsize))


def _round_down(x: int, m: int) -> int:
    return (x // m) * m


def _round_up(x: int, m: int) -> int:
    return ((x + m - 1) // m) * m


def _choose_tiles(R: int, HW: int, itemsize: int, packing: int):
    """Byte-budget tiling with full-extent lane blocks for HW % 128 != 0."""
    budget_elems = max(_TARGET_BLOCK_BYTES // itemsize, packing * _LANE)

    if R <= packing:
        row_cap = R                       # full-extent row block (exempt from %8)
    else:
        # >=2 row blocks so both v7x TensorCores get work; no-op on 1-TC chips.
        row_cap = min(_round_down(R, packing), _round_up((R + 1) // 2, packing))
        row_cap = max(row_cap, packing)

    if HW * packing <= budget_elems:
        # Full-extent lane block (exempt from the 128-divisibility rule):
        # removes ragged HW tails / masked partial stores for CNN maps.
        hw_tile = HW
        rows_fit = max(budget_elems // HW, packing)
    else:
        # Very large HW: fall back to 128-multiple lane tiles sized by budget.
        hw_tile = min(_round_down(HW, _LANE),
                      max(_round_down(budget_elems // packing, _LANE), _LANE))
        rows_fit = max(budget_elems // hw_tile, packing)

    row_tile = min(row_cap, _round_down(rows_fit, packing))
    row_tile = max(row_tile, min(R, packing))
    return row_tile, hw_tile


def _pick_compute_dtype(x_dtype):
    """f32 everywhere except native bf16 FMA on chips with a bf16 VPU."""
    x_dtype = jnp.dtype(x_dtype)
    if x_dtype != jnp.dtype(jnp.bfloat16):
        return jnp.float32
    try:
        kind = jax.devices()[0].device_kind.lower()
    except Exception:
        return jnp.float32
    if "v5" in kind:                      # v5e/v5p: no bf16 VALU -> keep f32
        return jnp.float32
    return jnp.bfloat16


def _frozen_bn_kernel(x_ref, p_ref, o_ref):
    # x_ref: (row_tile, hw_tile); p_ref: (row_tile, 2) = [scale | shift].
    p = p_ref[...]
    scale = p[:, 0:1]
    shift = p[:, 1:2]
    x = x_ref[...].astype(p.dtype)
    o_ref[...] = (x * scale + shift).astype(o_ref.dtype)


def frozen_batch_norm_2d(x_nchw, weight, bias, running_mean, running_var,
                         eps=1e-5, compute_dtype=None):
    """x_nchw: (N, C, H, W); params: (C,). Returns NCHW, same dtype as x."""
    N, C, H, W = x_nchw.shape
    HW = H * W
    R = N * C

    # Per-channel scale/shift folded once in f32 (tiny; fuses into XLA).
    w32 = weight.astype(jnp.float32)
    b32 = bias.astype(jnp.float32)
    rm32 = running_mean.astype(jnp.float32)
    rv32 = running_var.astype(jnp.float32)
    scale = w32 * lax.rsqrt(rv32 + jnp.float32(eps))        # (C,)
    shift = b32 - rm32 * scale                               # (C,)

    # TODO(synk): PyTorch type promotion would yield f32 output for bf16/f16 x;
    # we keep x.dtype on purpose to halve write bandwidth.
    out_dtype = x_nchw.dtype

    if HW < _LANE:
        # Tiny spatial maps (e.g. 7x7=49) collapse lane utilization in a kernel;
        # route them to plain XLA (identical numerics, f32 accumulate).
        y = (x_nchw.astype(jnp.float32) * scale[None, :, None, None]
             + shift[None, :, None, None])
        return y.astype(out_dtype)

    if compute_dtype is None:
        compute_dtype = _pick_compute_dtype(x_nchw.dtype)
    compute_dtype = jnp.dtype(compute_dtype)

    # Fold N into the row (sublane) axis; pack scale & shift side by side so
    # each row tile needs a single small param DMA.
    x2 = x_nchw.reshape(R, HW)
    params = jnp.stack([scale, shift], axis=-1)              # (C, 2) f32
    params = jnp.broadcast_to(params[None], (N, C, 2)).reshape(R, 2)
    params = params.astype(compute_dtype)

    itemsize = int(jnp.dtype(x2.dtype).itemsize)
    out_itemsize = int(jnp.dtype(out_dtype).itemsize)
    packing = _sublane_packing(x2.dtype)
    row_tile, hw_tile = _choose_tiles(R, HW, itemsize, packing)
    # HW axis innermost: the param block index (r, 0) stays constant across
    # consecutive steps, so Pallas skips its re-fetch.
    grid = (pl.cdiv(R, row_tile), pl.cdiv(HW, hw_tile))

    x_spec = pl.BlockSpec((row_tile, hw_tile), lambda r, s: (r, s))
    p_spec = pl.BlockSpec((row_tile, 2), lambda r, s: (r, 0))
    o_spec = pl.BlockSpec((row_tile, hw_tile), lambda r, s: (r, s))

    # Double-buffered in/out/param blocks + slack; tight request, capped so it
    # stays well inside v7x's 64 MiB per-TC VMEM.
    in_block = row_tile * hw_tile * itemsize
    out_block = row_tile * hw_tile * out_itemsize
    p_block = row_tile * 2 * int(compute_dtype.itemsize)
    need = 2 * (in_block + out_block + p_block)
    vmem_limit = int(min(max(need + (2 << 20), 8 << 20), _VMEM_REQUEST_CAP))

    cost = pl.CostEstimate(
        flops=2 * R * HW,
        transcendentals=0,
        bytes_accessed=R * HW * (itemsize + out_itemsize)
        + R * 2 * int(compute_dtype.itemsize),
    )

    out2 = pl.pallas_call(
        _frozen_bn_kernel,
        out_shape=jax.ShapeDtypeStruct((R, HW), out_dtype),
        grid_spec=pltpu.PrefetchScalarGridSpec(
            num_scalar_prefetch=0,
            grid=grid,
            in_specs=[x_spec, p_spec],
            out_specs=o_spec,
        ),
        compiler_params=pltpu.CompilerParams(
            dimension_semantics=("parallel", "parallel"),
            vmem_limit_bytes=vmem_limit,
        ),
        cost_estimate=cost,
    )(x2, params)

    return out2.reshape(N, C, H, W)


if __name__ == "__main__":
    key = jax.random.PRNGKey(0)
    N, C, H, W = 2, 4, 16, 16
    kx, kw, kb, km, kv = jax.random.split(key, 5)

    x = jax.random.normal(kx, (N, C, H, W), dtype=jnp.float32)
    # Deterministic "frozen" buffers (perturbed so the affine is non-trivial).
    weight = jnp.ones((C,), jnp.float32) + 0.1 * jax.random.normal(kw, (C,), jnp.float32)
    bias = jnp.zeros((C,), jnp.float32) + 0.1 * jax.random.normal(kb, (C,), jnp.float32)
    running_mean = 0.1 * jax.random.normal(km, (C,), jnp.float32)
    running_var = jnp.ones((C,), jnp.float32) + 0.1 * jnp.abs(
        jax.random.normal(kv, (C,), jnp.float32)
    )

    y = frozen_batch_norm_2d(x, weight, bias, running_mean, running_var)
    y = jax.block_until_ready(y)

    # Pure-JAX reference (matches the PyTorch forward exactly).
    eps = 1e-05
    scale_ref = weight.reshape(1, C, 1, 1) * lax.rsqrt(running_var.reshape(1, C, 1, 1) + eps)
    bias_ref = bias.reshape(1, C, 1, 1) - running_mean.reshape(1, C, 1, 1) * scale_ref
    y_ref = x * scale_ref + bias_ref

    assert y.shape == (N, C, H, W)
    assert y.dtype == x.dtype
    assert jnp.allclose(y, y_ref, atol=1e-5, rtol=1e-5)
    print("KERNEL_OK")
</pallas_src>

<mosaic_0001>
module attributes {stable_mosaic.version = 11 : i64} {
  func.func @_frozen_bn_kernel(%arg0: i32, %arg1: i32, %arg2: memref<8x256xf32, #tpu.memory_space<vmem>>, %arg3: memref<8x2xf32, #tpu.memory_space<vmem>>, %arg4: memref<8x256xf32, #tpu.memory_space<vmem>>) attributes {dimension_semantics = [#tpu.dimension_semantics<parallel>, #tpu.dimension_semantics<parallel>], iteration_bounds = array<i64: 1, 1>, scalar_prefetch = 0 : i64, scratch_operands = 0 : i64, tpu.core_type = #tpu.core_type<tc>, window_params = [{transform_indices = @transform_0, window_bounds = array<i64: 8, 256>}, {transform_indices = @transform_1, window_bounds = array<i64: 8, 2>}, {transform_indices = @transform_2, window_bounds = array<i64: 8, 256>}]} {
    %c0 = arith.constant 0 : index
    %c0_0 = arith.constant 0 : index
    %0 = vector.load %arg3[%c0, %c0_0] : memref<8x2xf32, #tpu.memory_space<vmem>>, vector<8x2xf32>
    %1 = vector.extract_strided_slice %0 {offsets = [0, 0], sizes = [8, 1], strides = [1, 1]} : vector<8x2xf32> to vector<8x1xf32>
    %2 = vector.extract_strided_slice %0 {offsets = [0, 1], sizes = [8, 1], strides = [1, 1]} : vector<8x2xf32> to vector<8x1xf32>
    %c0_1 = arith.constant 0 : index
    %c0_2 = arith.constant 0 : index
    %3 = vector.load %arg2[%c0_1, %c0_2] : memref<8x256xf32, #tpu.memory_space<vmem>>, vector<8x256xf32>
    %4 = vector.broadcast %1 : vector<8x1xf32> to vector<8x256xf32>
    %5 = arith.mulf %3, %4 : vector<8x256xf32>
    %6 = vector.broadcast %2 : vector<8x1xf32> to vector<8x256xf32>
    %7 = arith.addf %5, %6 : vector<8x256xf32>
    %c0_3 = arith.constant 0 : index
    %c0_4 = arith.constant 0 : index
    %8 = vector.load %arg4[%c0_3, %c0_4] : memref<8x256xf32, #tpu.memory_space<vmem>>, vector<8x256xf32>
    tpu.vector_store %arg4[%c0_3, %c0_4], %7 {strides = array<i32>} : memref<8x256xf32, #tpu.memory_space<vmem>>, vector<8x256xf32>,
    return
  }
  func.func @transform_0(%arg0: i32, %arg1: i32) -> (i32, i32) {
    %c0_i32 = arith.constant 0 : i32
    return %arg0, %arg1 : i32, i32
  }
  func.func @transform_1(%arg0: i32, %arg1: i32) -> (i32, i32) {
    %c0_i32 = arith.constant 0 : i32
    %c0_i32_0 = arith.constant 0 : i32
    return %arg0, %c0_i32 : i32, i32
  }
  func.func @transform_2(%arg0: i32, %arg1: i32) -> (i32, i32) {
    %c0_i32 = arith.constant 0 : i32
    return %arg0, %arg1 : i32, i32
  }
}

</mosaic_0001>

<bundles_post_ra>
// kernel: tpu_custom_call.1
= control target key start
LH: loop header
LB: loop body
LE: loop exit
PB: predicated region body
PF: predicated region fallthrough
CT: control target
= control target key end

     0   :  { %7 = vsyncpa [#allocation3], 0  ;;  %s157_s0 = inlined_call_operand.hbm [shape: f32[8,256], index: 0, kind: input, shape index: {}]   ;;  %s158_s1 = inlined_call_operand.vmem [shape: f32[8,2], index: 1, kind: input, shape index: {}]   ;;  %s159_s2 = inlined_call_operand.hbm [shape: f32[8,256], index: 2, kind: output, shape index: {}]  }
   0x1   :  { %8 = vsyncpa [#allocation4], 0  ;;  %s111_s9 = smov [#allocation2]   ;;  %s63_s13 = scalar_lea.hbm %s157_s0, 256 }
   0x2   :  { %s15_s10 = sshll.u32 %s111_s9, 4  ;;  %p64_p0 = scmp.ne.s32.totalorder %s157_s0, %s63_s13  ;;  %s16_s10 = int_to_ptr.vmem [resolvable:$true] %s15_s10 }
   0x3   :  { %p67_p1 = scmp.lt.u32.totalorder %s63_s13, %s157_s0 }
   0x5   :  { %p69_p2 = pnand %p67_p1, %p64_p0 }
   0x7   :  { %72 = shalt.err (!%p69_p2)
}
   0x8   :  { %s73_s18 = scalar_lea.vmem %s16_s10, 256  ;;  %p78_p4 = scmp.lt.s32.totalorder %s16_s10, %s16_s10 }
   0x9   :  { %p74_p3 = scmp.ne.s32.totalorder %s16_s10, %s73_s18  ;;  %p79_p5 = scmp.lt.s32.totalorder %s73_s18, %s73_s18 }
   0xb   :  { %p80_p6 = por %p79_p5, %p78_p4 }
   0xd   :  { %p81_p7 = pnand %p80_p6, %p74_p3 }
   0xf   :  { %84 = shalt.err (!%p81_p7)
}
  0x10   :  { %18 = dma.hbm_to_vmem [thread:$0]  %s157_s0, 256, %s16_s10, [#allocation3]  }
  0x11   :  { %107 = dma.done.wait [#allocation3], 256  }
  0x12   :  { %108 = vsyncadd [#allocation3], 4294967040  ;;  %v112_v0 = vmov 0   ;;  %v24_v1 = vld [vmem:[%s158_s1] sm:$0xff]  ;;  %v113_v2 = vmov 1   ;;  %v26_v5 = vld [vmem:[#allocation2 + $0x8] sm:$0xff] }
  0x13   :  { %61 = vset.pattern.permute.xlu0 %v112_v0  ;;  %v25_v4 = vld [vmem:[#allocation2] sm:$0xff]  ;;  %s114_s23 = smov [#allocation5]  }
  0x14   :  { %29 = vperm.xlu0 %61, %v24_v1   ;;  %s48_s24 = sshll.u32 %s114_s23, 4  ;;  %s49_s24 = int_to_ptr.vmem [resolvable:$true] %s48_s24 }
  0x15   :  { %s85_s0 = scalar_lea.vmem %s49_s24, 256  ;;  %p90_p9 = scmp.lt.s32.totalorder %s49_s24, %s49_s24 }
  0x16   :  { %p86_p8 = scmp.ne.s32.totalorder %s49_s24, %s85_s0  ;;  %p91_p10 = scmp.lt.s32.totalorder %s85_s0, %s85_s0 }
  0x18   :  { %62 = vset.pattern.permute.xlu0 %v113_v2  ;;  %p92_p11 = por %p91_p10, %p90_p9 }
  0x19   :  { %35 = vperm.xlu0 %62, %v24_v1  }
  0x1a   :  { %p93_p12 = pnand %p92_p11, %p86_p8 }
  0x93   :  { %v30_v3 = vpop.permute.xlu0 %29 }
  0x94   :  { %v32_v6 = vmul.f32 %v30_v3, %v25_v4  ;;  %v33_v7 = vmul.f32 %v30_v3, %v26_v5 }
  0x98   :  { %v36_v8 = vpop.permute.xlu0 %35 }
  0x99   :  { %v38_v9 = vadd.f32 %v36_v8, %v32_v6  ;;  %v39_v10 = vadd.f32 %v36_v8, %v33_v7 }
  0x9b   :  { %40 = vst [vmem:[#allocation5] sm:$0xff] %v38_v9  ;;  %41 = vst [vmem:[#allocation5 + $0x8] sm:$0xff] %v39_v10 }
  0x9c   :  { %96 = shalt.err (!%p93_p12)
}
  0x9d   :  { %s97_s26 = scalar_lea.hbm %s159_s2, 256 }
  0x9e   :  { %p98_p13 = scmp.ne.s32.totalorder %s159_s2, %s97_s26  ;;  %p101_p0 = scmp.lt.u32.totalorder %s97_s26, %s159_s2 }
  0xa0   :  { %p103_p1 = pnand %p101_p0, %p98_p13 }
  0xa2   :  { %106 = shalt.err (!%p103_p1)
}
  0xa3   :  { %51 = dma.vmem_to_hbm [thread:$0]  %s49_s24, 256, %s159_s2, [#allocation4]  }
  0xa4   :  { %109 = dma.done.wait [#allocation4], 256  }
  0xa5   :  { %110 = vsyncadd [#allocation4], 4294967040 }
  0xa6   :  { %55 = vsyncpa [#allocation3], 1 }
  0xa7   :  { %56 = vsyncpa [#allocation4], 1 }

</bundles_post_ra>
